<compile_context>
chip_gen: v6e
topology: v6e:2x2x1
jax: 0.10.0
libtpu: 0.0.40
codegen_flags: <defaults>
</compile_context>

<pallas_src>
import numpy as np
import jax
import jax.numpy as jnp
from jax.experimental import pallas as pl
from jax.experimental.pallas import tpu as pltpu

# ----------------------------- model constants -----------------------------
NUM_BETAS = 10
NUM_BODY_JOINTS = 21
NUM_HAND_JOINTS = 15
NJ = 1 + NUM_BODY_JOINTS + 2 * NUM_HAND_JOINTS            # 52 joints (incl. root)
V = 128                                                    # synthetic vertex count
NUM_PCA = 6                                                # hand PCA comps (input_size=6)
POSE_FEAT = (NJ - 1) * 9                                   # 459 pose blend features
POSE_PAD = 512                                             # K padded to a multiple of 128


# ------------------ Pallas kernel: fused blendshapes + LBS + transl ------------------
def lbs_kernel(feat_ref, betas_ref, a_ref, posedirs_ref, shapedirs_ref,
               vt_ref, wt_ref, transl_ref, o_ref):
    # feat     : (B, 512)   bf16  pose feature, zero-padded from 459 to 512
    # betas    : (B, 10)    f32   shape coefficients (kept f32 for fidelity)
    # a        : (12B, NJ)  f32   rel. joint transforms, rows ordered (c, r, b)
    # posedirs : (512, 3V)  bf16  pose blend dirs, coordinate-major columns (padded rows zero)
    # shapedirs: (10, 3V)   f32   shape blend dirs, coordinate-major columns
    # vt       : (1, 3V)    f32   template vertices, coordinate-major
    # wt       : (NJ, V)    f32   skinning weights, transposed
    # transl   : (3B, 1)    f32   per-row translation, rows ordered (r, b)
    # o        : (3B, V)    f32   vertices, rows ordered (r, b)
    B = betas_ref.shape[0]
    Vl = wt_ref.shape[1]
    n = 3 * B

    # pose blendshapes: one bf16 MXU matmul (K=512, 128-aligned), f32 accumulation
    pose_off = jnp.dot(feat_ref[...], posedirs_ref[...],
                       preferred_element_type=jnp.float32)            # (B, 3V)
    # shape blendshapes: tiny exact f32 matmul (betas fidelity, K=10)
    shape_off = jnp.dot(betas_ref[...], shapedirs_ref[...],
                        preferred_element_type=jnp.float32)           # (B, 3V)
    v_posed = vt_ref[...] + shape_off + pose_off                       # (B, 3V)

    # skinning transforms for the whole batch in one matmul
    t = jnp.dot(a_ref[...], wt_ref[...],
                preferred_element_type=jnp.float32)                    # (12B, V)

    x = v_posed[:, 0:Vl]
    y = v_posed[:, Vl:2 * Vl]
    z = v_posed[:, 2 * Vl:3 * Vl]

    # unrolled affine combine over the 3 output coordinates (no sublane-concatenate replication),
    # translation folded in per row
    for r in range(3):
        o_ref[r * B:(r + 1) * B, :] = (
            t[0 * n + r * B:0 * n + (r + 1) * B, :] * x
            + t[1 * n + r * B:1 * n + (r + 1) * B, :] * y
            + t[2 * n + r * B:2 * n + (r + 1) * B, :] * z
            + t[3 * n + r * B:3 * n + (r + 1) * B, :]
            + transl_ref[r * B:(r + 1) * B, :])


def run_lbs(feat_bf16, betas, a_flat, posedirs_bf16, shapedirs_cm, vt_flat, w_t, transl_col):
    B = betas.shape[0]
    flops = (2 * B * POSE_PAD * 3 * V      # pose blendshapes (bf16 MXU)
             + 2 * B * NUM_BETAS * 3 * V   # shape blendshapes (f32)
             + 2 * 12 * B * NJ * V         # skinning transforms
             + 8 * 3 * B * V)              # affine combine + transl
    bytes_accessed = (feat_bf16.size * 2 + betas.size * 4 + a_flat.size * 4
                      + posedirs_bf16.size * 2 + shapedirs_cm.size * 4
                      + vt_flat.size * 4 + w_t.size * 4 + transl_col.size * 4
                      + 3 * B * V * 4)
    return pl.pallas_call(
        lbs_kernel,
        out_shape=jax.ShapeDtypeStruct((3 * B, V), jnp.float32),
        in_specs=[pl.BlockSpec(memory_space=pltpu.MemorySpace.VMEM)] * 8,
        out_specs=pl.BlockSpec(memory_space=pltpu.MemorySpace.VMEM),
        cost_estimate=pl.CostEstimate(flops=flops, transcendentals=0,
                                      bytes_accessed=bytes_accessed),
    )(feat_bf16, betas, a_flat, posedirs_bf16, shapedirs_cm, vt_flat, w_t, transl_col)


# ------------------------- plain-JAX glue (small ops) -----------------------
def batch_rodrigues(rot_vecs):
    angle = jnp.linalg.norm(rot_vecs + 1e-8, axis=1, keepdims=True)          # (N,1)
    rot_dir = rot_vecs / angle
    cos = jnp.cos(angle)[:, :, None]
    sin = jnp.sin(angle)[:, :, None]
    rx, ry, rz = rot_dir[:, 0], rot_dir[:, 1], rot_dir[:, 2]
    zeros = jnp.zeros_like(rx)
    K = jnp.stack([zeros, -rz, ry, rz, zeros, -rx, -ry, rx, zeros],
                  axis=1).reshape(-1, 3, 3)
    ident = jnp.eye(3, dtype=rot_vecs.dtype)[None]
    return ident + sin * K + (1.0 - cos) * jnp.matmul(K, K)


def _kinematic_levels(parents):
    depth = [0] * NJ
    for i in range(1, NJ):
        depth[i] = depth[parents[i]] + 1
    return [np.array([i for i in range(NJ) if depth[i] == d], dtype=np.int32)
            for d in range(max(depth) + 1)]


def batch_rigid_transform_levels(rot_mats, joints, parents, levels):
    """Forward kinematics: one batched 4x4 matmul per tree-depth level
    (~5 ops) instead of a 51-step unrolled per-joint chain."""
    B = joints.shape[0]
    parents_np = np.asarray(parents, dtype=np.int64)
    rel_joints = jnp.concatenate(
        [joints[:, :1], joints[:, 1:] - joints[:, parents_np[1:]]], axis=1)
    top = jnp.concatenate([rot_mats, rel_joints[..., None]], axis=-1)        # (B,NJ,3,4)
    bottom = jnp.broadcast_to(
        jnp.array([0.0, 0.0, 0.0, 1.0], dtype=joints.dtype), (B, NJ, 1, 4))
    tmats = jnp.concatenate([top, bottom], axis=2)                           # (B,NJ,4,4)

    g_levels = [tmats[:, levels[0]]]
    for d in range(1, len(levels)):
        nodes = levels[d]
        prev = levels[d - 1]
        pos = np.searchsorted(prev, parents_np[nodes])                       # static gather idx
        g_parent = g_levels[-1][:, pos]                                      # (B, n_d, 4, 4)
        g_levels.append(jnp.einsum("bnij,bnjk->bnik", g_parent, tmats[:, nodes]))
    transforms = jnp.concatenate(g_levels, axis=1)                           # (B,NJ,4,4)
    order = np.concatenate(levels)
    if not np.array_equal(order, np.arange(NJ)):
        transforms = transforms[:, np.argsort(order)]

    posed_joints = transforms[:, :, :3, 3]
    joints_h = jnp.concatenate([joints, jnp.zeros((B, NJ, 1), joints.dtype)], axis=2)
    correction = jnp.einsum("bnij,bnj->bni", transforms, joints_h)           # (B,NJ,4)
    rel_transforms = transforms.at[:, :, :, 3].add(-correction)
    return rel_transforms, posed_joints


def init_params(key=jax.random.PRNGKey(1234)):
    ks = jax.random.split(key, 9)
    v_template = jax.random.normal(ks[0], (V, 3), jnp.float32) * 0.1
    shapedirs = jax.random.normal(ks[1], (V, 3, NUM_BETAS), jnp.float32) * 0.01
    posedirs_flat = jax.random.normal(ks[2], (POSE_FEAT, 3 * V), jnp.float32) * 0.01
    J_regressor = jax.nn.softmax(jax.random.normal(ks[3], (NJ, V), jnp.float32), axis=1)
    lbs_weights = jax.nn.softmax(jax.random.normal(ks[4], (V, NJ), jnp.float32), axis=1)
    lh_comp = jax.random.normal(ks[5], (NUM_PCA, 45), jnp.float32) * 0.1
    rh_comp = jax.random.normal(ks[6], (NUM_PCA, 45), jnp.float32) * 0.1
    lh_mean = jax.random.normal(ks[7], (45,), jnp.float32) * 0.05
    rh_mean = jax.random.normal(ks[8], (45,), jnp.float32) * 0.05
    parents = [-1] + [(i - 1) // 2 for i in range(1, NJ)]
    levels = _kinematic_levels(parents)

    # kernel operands: coordinate-major vertex layout
    vt_flat = v_template.T.reshape(1, 3 * V)                                  # (1, 3V)  f32
    shapedirs_cm = shapedirs.transpose(2, 1, 0).reshape(NUM_BETAS, 3 * V)     # (10, 3V) f32 (exact)
    # pose blend dirs: K zero-padded 459 -> 512 (128-aligned MXU K loop), bf16 weights
    posedirs_pad_bf16 = jnp.zeros((POSE_PAD, 3 * V), jnp.float32) \
        .at[:POSE_FEAT].set(posedirs_flat).astype(jnp.bfloat16)               # (512, 3V)
    w_t = lbs_weights.T                                                       # (NJ, V)  f32
    # rest-joint regressor folded through the (linear) shape blend -> tiny constants
    j_template = jnp.dot(J_regressor, v_template)                             # (NJ, 3)
    j_dirs = jnp.einsum("jv,vcl->jcl", J_regressor, shapedirs)                # (NJ, 3, 10)

    return dict(v_template=v_template, shapedirs=shapedirs, posedirs_flat=posedirs_flat,
                J_regressor=J_regressor, lbs_weights=lbs_weights,
                lh_comp=lh_comp, rh_comp=rh_comp, lh_mean=lh_mean, rh_mean=rh_mean,
                parents=parents, levels=levels,
                vt_flat=vt_flat, shapedirs_cm=shapedirs_cm,
                posedirs_pad_bf16=posedirs_pad_bf16, w_t=w_t,
                j_template=j_template, j_dirs=j_dirs)


PARAMS = init_params()


def mano_reprojection_forward(inp, transl, body_pose, betas=None, hand="left"):
    """Equivalent of MANO_Reprojection.forward: returns (vertices, joints, full_pose)."""
    p = PARAMS
    B = inp.shape[0]
    global_orient = jnp.zeros((B, 3), jnp.float32)
    if betas is None:
        betas = jnp.zeros((B, NUM_BETAS), jnp.float32)

    left_hand_pose = inp if hand == "left" else jnp.zeros((B, NUM_PCA), jnp.float32)
    right_hand_pose = inp if hand == "right" else jnp.zeros((B, NUM_PCA), jnp.float32)
    lh_full = p["lh_mean"] + left_hand_pose @ p["lh_comp"]        # PCA -> 45 dim
    rh_full = p["rh_mean"] + right_hand_pose @ p["rh_comp"]

    full_pose = jnp.concatenate(
        [global_orient, body_pose, lh_full, rh_full], axis=1)     # (B, 3*NJ)
    rot_mats = batch_rodrigues(full_pose.reshape(-1, 3)).reshape(B, NJ, 3, 3)
    pose_feature = (rot_mats[:, 1:] - jnp.eye(3, dtype=jnp.float32)).reshape(B, POSE_FEAT)
    # pad K 459->512 and cast to bf16; elementwise, fuses with the rodrigues fusion
    feat_bf16 = jnp.pad(pose_feature, ((0, 0), (0, POSE_PAD - POSE_FEAT))).astype(jnp.bfloat16)

    # rest joints (regressor folded through the shape blend; f32, exact)
    j_rest = p["j_template"][None] + jnp.einsum("bl,jcl->bjc", betas, p["j_dirs"])

    # forward kinematics (level-parallel chain, stays in XLA)
    a_rel, posed_joints = batch_rigid_transform_levels(
        rot_mats, j_rest, p["parents"], p["levels"])
    # rows ordered (c, r, b) so the kernel slices full-sublane blocks per column c
    a_flat = jnp.transpose(a_rel[:, :, :3, :], (3, 2, 0, 1)).reshape(12 * B, NJ)
    transl_col = transl.T.reshape(3 * B, 1)                       # row (r, b) -> transl[b, r]

    # --- single fused Pallas kernel: blendshapes + skinning + transl -> (3, B, V) coord-major
    verts_cm = run_lbs(feat_bf16, betas, a_flat, p["posedirs_pad_bf16"],
                       p["shapedirs_cm"], p["vt_flat"], p["w_t"], transl_col)
    vertices = verts_cm.reshape(3, B, V).transpose(1, 2, 0)       # -> (B, V, 3)
    joints = posed_joints + transl[:, None, :]
    return vertices, joints, full_pose


# ------------------------------- reference ---------------------------------
def _reference_rigid_transform(rot_mats, joints, parents):
    # original per-joint sequential formulation (verification only)
    B = joints.shape[0]
    par = np.asarray(parents[1:], dtype=np.int64)
    rel_joints = jnp.concatenate([joints[:, :1], joints[:, 1:] - joints[:, par]], axis=1)
    top = jnp.concatenate([rot_mats, rel_joints[..., None]], axis=-1)
    bottom = jnp.broadcast_to(jnp.array([0.0, 0.0, 0.0, 1.0], jnp.float32), (B, NJ, 1, 4))
    tmats = jnp.concatenate([top, bottom], axis=2)
    chain = [tmats[:, 0]]
    for i in range(1, NJ):
        chain.append(jnp.matmul(chain[parents[i]], tmats[:, i]))
    transforms = jnp.stack(chain, axis=1)
    posed_joints = transforms[:, :, :3, 3]
    joints_h = jnp.concatenate([joints, jnp.zeros((B, NJ, 1), jnp.float32)], axis=2)[..., None]
    correction = jnp.matmul(transforms, joints_h)[..., 0]
    rel_transforms = transforms.at[:, :, :, 3].add(-correction)
    return rel_transforms, posed_joints


def reference_forward(inp, transl, body_pose, betas=None, hand="left"):
    p = PARAMS
    B = inp.shape[0]
    global_orient = jnp.zeros((B, 3), jnp.float32)
    if betas is None:
        betas = jnp.zeros((B, NUM_BETAS), jnp.float32)
    lh = (inp if hand == "left" else jnp.zeros((B, NUM_PCA))) @ p["lh_comp"] + p["lh_mean"]
    rh = (inp if hand == "right" else jnp.zeros((B, NUM_PCA))) @ p["rh_comp"] + p["rh_mean"]
    full_pose = jnp.concatenate([global_orient, body_pose, lh, rh], axis=1)
    rot_mats = batch_rodrigues(full_pose.reshape(-1, 3)).reshape(B, NJ, 3, 3)
    pose_feature = (rot_mats[:, 1:] - jnp.eye(3)).reshape(B, POSE_FEAT)

    # shape blend + joints fully in f32 (original formulation)
    v_shaped = p["v_template"][None] + jnp.einsum("bl,vcl->bvc", betas, p["shapedirs"])
    joints_rest = jnp.einsum("jv,bvc->bjc", p["J_regressor"], v_shaped)

    # pose blend offsets mirror the kernel's bf16-weight matmul (f32 accumulation)
    feat_pad = jnp.pad(pose_feature, ((0, 0), (0, POSE_PAD - POSE_FEAT))).astype(jnp.bfloat16)
    off_cm = jnp.dot(feat_pad, p["posedirs_pad_bf16"], preferred_element_type=jnp.float32)
    v_posed = v_shaped + off_cm.reshape(B, 3, V).transpose(0, 2, 1)

    a_rel, posed_joints = _reference_rigid_transform(rot_mats, joints_rest, p["parents"])
    T = jnp.einsum("vj,bjrc->bvrc", p["lbs_weights"], a_rel)
    vph = jnp.concatenate([v_posed, jnp.ones((B, V, 1), jnp.float32)], axis=-1)
    verts = jnp.einsum("bvrc,bvc->bvr", T[:, :, :3, :], vph) + transl[:, None, :]
    return verts, posed_joints + transl[:, None, :]


# ---------------------------------- main ------------------------------------
if __name__ == "__main__":
    key = jax.random.PRNGKey(0)
    k1, k2, k3, k4 = jax.random.split(key, 4)
    fwd = jax.jit(mano_reprojection_forward)

    # B=2: module-scale test. B=16: sublane-aligned batched path (amortized fixed cost).
    for B in (2, 16):
        inp = jax.random.normal(k1, (B, NUM_PCA), jnp.float32) * 0.5      # hand PCA pose (B, 6)
        transl = jax.random.normal(k2, (B, 3), jnp.float32) * 0.1
        body_pose = jax.random.normal(k3, (B, 3 * NUM_BODY_JOINTS), jnp.float32) * 0.2
        betas = jax.random.normal(k4, (B, NUM_BETAS), jnp.float32) * 0.5  # nonzero: f32 shape path

        vertices, joints, full_pose = fwd(inp, transl, body_pose, betas)
        jax.block_until_ready((vertices, joints, full_pose))

        ref_verts, ref_joints = reference_forward(inp, transl, body_pose, betas)
        np.testing.assert_allclose(np.asarray(vertices), np.asarray(ref_verts),
                                   rtol=1e-4, atol=1e-4)
        np.testing.assert_allclose(np.asarray(joints), np.asarray(ref_joints),
                                   rtol=1e-4, atol=1e-4)
        assert vertices.shape == (B, V, 3) and joints.shape == (B, NJ, 3)
        assert full_pose.shape == (B, 3 * NJ)

    print("KERNEL_OK")
</pallas_src>

<mosaic_0001>
module attributes {stable_mosaic.version = 11 : i64} {
  func.func @lbs_kernel(%arg0: memref<2x512xbf16, #tpu.memory_space<vmem>>, %arg1: memref<2x10xf32, #tpu.memory_space<vmem>>, %arg2: memref<24x52xf32, #tpu.memory_space<vmem>>, %arg3: memref<512x384xbf16, #tpu.memory_space<vmem>>, %arg4: memref<10x384xf32, #tpu.memory_space<vmem>>, %arg5: memref<1x384xf32, #tpu.memory_space<vmem>>, %arg6: memref<52x128xf32, #tpu.memory_space<vmem>>, %arg7: memref<6x1xf32, #tpu.memory_space<vmem>>, %arg8: memref<6x128xf32, #tpu.memory_space<vmem>>) attributes {dimension_semantics = [], scalar_prefetch = 0 : i64, scratch_operands = 0 : i64, tpu.core_type = #tpu.core_type<tc>} {
    %c0 = arith.constant 0 : index
    %c0_0 = arith.constant 0 : index
    %0 = vector.load %arg0[%c0, %c0_0] : memref<2x512xbf16, #tpu.memory_space<vmem>>, vector<2x512xbf16>
    %c0_1 = arith.constant 0 : index
    %c0_2 = arith.constant 0 : index
    %1 = vector.load %arg3[%c0_1, %c0_2] : memref<512x384xbf16, #tpu.memory_space<vmem>>, vector<512x384xbf16>
    %cst = arith.constant dense<0.000000e+00> : vector<2x384xf32>
    %2 = tpu.matmul %0, %1, %cst {dimension_numbers = #tpu.dot_dimension_numbers<[1], [0], [0], [1], [0, 0, 1, 1], [], []>} : vector<2x512xbf16>, vector<512x384xbf16>, vector<2x384xf32> -> vector<2x384xf32>
    %c0_3 = arith.constant 0 : index
    %c0_4 = arith.constant 0 : index
    %3 = vector.load %arg1[%c0_3, %c0_4] : memref<2x10xf32, #tpu.memory_space<vmem>>, vector<2x10xf32>
    %c0_5 = arith.constant 0 : index
    %c0_6 = arith.constant 0 : index
    %4 = vector.load %arg4[%c0_5, %c0_6] : memref<10x384xf32, #tpu.memory_space<vmem>>, vector<10x384xf32>
    %cst_7 = arith.constant dense<0.000000e+00> : vector<2x384xf32>
    %5 = tpu.matmul %3, %4, %cst_7 {dimension_numbers = #tpu.dot_dimension_numbers<[1], [0], [0], [1], [0, 0, 1, 1], [], []>} : vector<2x10xf32>, vector<10x384xf32>, vector<2x384xf32> -> vector<2x384xf32>
    %c0_8 = arith.constant 0 : index
    %c0_9 = arith.constant 0 : index
    %6 = vector.load %arg5[%c0_8, %c0_9] : memref<1x384xf32, #tpu.memory_space<vmem>>, vector<1x384xf32>
    %7 = vector.broadcast %6 : vector<1x384xf32> to vector<2x384xf32>
    %8 = arith.addf %7, %5 : vector<2x384xf32>
    %9 = arith.addf %8, %2 : vector<2x384xf32>
    %c0_10 = arith.constant 0 : index
    %c0_11 = arith.constant 0 : index
    %10 = vector.load %arg2[%c0_10, %c0_11] : memref<24x52xf32, #tpu.memory_space<vmem>>, vector<24x52xf32>
    %c0_12 = arith.constant 0 : index
    %c0_13 = arith.constant 0 : index
    %11 = vector.load %arg6[%c0_12, %c0_13] : memref<52x128xf32, #tpu.memory_space<vmem>>, vector<52x128xf32>
    %cst_14 = arith.constant dense<0.000000e+00> : vector<24x128xf32>
    %12 = tpu.matmul %10, %11, %cst_14 {dimension_numbers = #tpu.dot_dimension_numbers<[1], [0], [0], [1], [0, 0, 1, 1], [], []>} : vector<24x52xf32>, vector<52x128xf32>, vector<24x128xf32> -> vector<24x128xf32>
    %13 = vector.extract_strided_slice %9 {offsets = [0, 0], sizes = [2, 128], strides = [1, 1]} : vector<2x384xf32> to vector<2x128xf32>
    %14 = vector.extract_strided_slice %9 {offsets = [0, 128], sizes = [2, 128], strides = [1, 1]} : vector<2x384xf32> to vector<2x128xf32>
    %15 = vector.extract_strided_slice %9 {offsets = [0, 256], sizes = [2, 128], strides = [1, 1]} : vector<2x384xf32> to vector<2x128xf32>
    %16 = vector.extract_strided_slice %12 {offsets = [0, 0], sizes = [2, 128], strides = [1, 1]} : vector<24x128xf32> to vector<2x128xf32>
    %17 = arith.mulf %16, %13 : vector<2x128xf32>
    %18 = vector.extract_strided_slice %12 {offsets = [6, 0], sizes = [2, 128], strides = [1, 1]} : vector<24x128xf32> to vector<2x128xf32>
    %19 = arith.mulf %18, %14 : vector<2x128xf32>
    %20 = arith.addf %17, %19 : vector<2x128xf32>
    %21 = vector.extract_strided_slice %12 {offsets = [12, 0], sizes = [2, 128], strides = [1, 1]} : vector<24x128xf32> to vector<2x128xf32>
    %22 = arith.mulf %21, %15 : vector<2x128xf32>
    %23 = arith.addf %20, %22 : vector<2x128xf32>
    %24 = vector.extract_strided_slice %12 {offsets = [18, 0], sizes = [2, 128], strides = [1, 1]} : vector<24x128xf32> to vector<2x128xf32>
    %25 = arith.addf %23, %24 : vector<2x128xf32>
    %c0_15 = arith.constant 0 : index
    %c0_16 = arith.constant 0 : index
    %26 = vector.load %arg7[%c0_15, %c0_16] : memref<6x1xf32, #tpu.memory_space<vmem>>, vector<2x1xf32>
    %27 = vector.broadcast %26 : vector<2x1xf32> to vector<2x128xf32>
    %28 = arith.addf %25, %27 : vector<2x128xf32>
    %c0_17 = arith.constant 0 : index
    %c0_18 = arith.constant 0 : index
    %29 = vector.load %arg8[%c0_17, %c0_18] : memref<6x128xf32, #tpu.memory_space<vmem>>, vector<2x128xf32>
    tpu.vector_store %arg8[%c0_17, %c0_18], %28 {strides = array<i32>} : memref<6x128xf32, #tpu.memory_space<vmem>>, vector<2x128xf32>,
    %30 = vector.extract_strided_slice %12 {offsets = [2, 0], sizes = [2, 128], strides = [1, 1]} : vector<24x128xf32> to vector<2x128xf32>
    %31 = arith.mulf %30, %13 : vector<2x128xf32>
    %32 = vector.extract_strided_slice %12 {offsets = [8, 0], sizes = [2, 128], strides = [1, 1]} : vector<24x128xf32> to vector<2x128xf32>
    %33 = arith.mulf %32, %14 : vector<2x128xf32>
    %34 = arith.addf %31, %33 : vector<2x128xf32>
    %35 = vector.extract_strided_slice %12 {offsets = [14, 0], sizes = [2, 128], strides = [1, 1]} : vector<24x128xf32> to vector<2x128xf32>
    %36 = arith.mulf %35, %15 : vector<2x128xf32>
    %37 = arith.addf %34, %36 : vector<2x128xf32>
    %38 = vector.extract_strided_slice %12 {offsets = [20, 0], sizes = [2, 128], strides = [1, 1]} : vector<24x128xf32> to vector<2x128xf32>
    %39 = arith.addf %37, %38 : vector<2x128xf32>
    %c2 = arith.constant 2 : index
    %c0_19 = arith.constant 0 : index
    %40 = vector.load %arg7[%c2, %c0_19] : memref<6x1xf32, #tpu.memory_space<vmem>>, vector<2x1xf32>
    %41 = vector.broadcast %40 : vector<2x1xf32> to vector<2x128xf32>
    %42 = arith.addf %39, %41 : vector<2x128xf32>
    %c2_20 = arith.constant 2 : index
    %c0_21 = arith.constant 0 : index
    %43 = vector.load %arg8[%c2_20, %c0_21] : memref<6x128xf32, #tpu.memory_space<vmem>>, vector<2x128xf32>
    tpu.vector_store %arg8[%c2_20, %c0_21], %42 {strides = array<i32>} : memref<6x128xf32, #tpu.memory_space<vmem>>, vector<2x128xf32>,
    %44 = vector.extract_strided_slice %12 {offsets = [4, 0], sizes = [2, 128], strides = [1, 1]} : vector<24x128xf32> to vector<2x128xf32>
    %45 = arith.mulf %44, %13 : vector<2x128xf32>
    %46 = vector.extract_strided_slice %12 {offsets = [10, 0], sizes = [2, 128], strides = [1, 1]} : vector<24x128xf32> to vector<2x128xf32>
    %47 = arith.mulf %46, %14 : vector<2x128xf32>
    %48 = arith.addf %45, %47 : vector<2x128xf32>
    %49 = vector.extract_strided_slice %12 {offsets = [16, 0], sizes = [2, 128], strides = [1, 1]} : vector<24x128xf32> to vector<2x128xf32>
    %50 = arith.mulf %49, %15 : vector<2x128xf32>
    %51 = arith.addf %48, %50 : vector<2x128xf32>
    %52 = vector.extract_strided_slice %12 {offsets = [22, 0], sizes = [2, 128], strides = [1, 1]} : vector<24x128xf32> to vector<2x128xf32>
    %53 = arith.addf %51, %52 : vector<2x128xf32>
    %c4 = arith.constant 4 : index
    %c0_22 = arith.constant 0 : index
    %54 = vector.load %arg7[%c4, %c0_22] : memref<6x1xf32, #tpu.memory_space<vmem>>, vector<2x1xf32>
    %55 = vector.broadcast %54 : vector<2x1xf32> to vector<2x128xf32>
    %56 = arith.addf %53, %55 : vector<2x128xf32>
    %c4_23 = arith.constant 4 : index
    %c0_24 = arith.constant 0 : index
    %57 = vector.load %arg8[%c4_23, %c0_24] : memref<6x128xf32, #tpu.memory_space<vmem>>, vector<2x128xf32>
    tpu.vector_store %arg8[%c4_23, %c0_24], %56 {strides = array<i32>} : memref<6x128xf32, #tpu.memory_space<vmem>>, vector<2x128xf32>,
    return
  }
}

</mosaic_0001>

<bundles_post_ra>
// kernel: neg.12
= control target key start
LH: loop header
LB: loop body
LE: loop exit
PB: predicated region body
PF: predicated region fallthrough
CT: control target
= control target key end

     0   :  { %s40_s0 = inlined_call_operand.vmem [shape: f32[2,52,4], index: 0, kind: input, shape index: {}]   ;;  %s41_s1 = inlined_call_operand.vmem [shape: f32[2,52,4], index: 1, kind: output, shape index: {}]  }
   0x1   :  { %v2_v0 = vld [vmem:[%s40_s0] sm:$0xf]  ;;  %v16_v1 = vld [vmem:[%s40_s0 + $0x4] sm:$0xf] }
   0x2   :  { %v5_v2 = vxor.u32 2147483648, %v2_v0  ;;  %v12_v3 = vxor.u32 2147483648, %v16_v1 }
   0x4   :  { %7 = vst [vmem:[%s41_s1] sm:$0xf] %v5_v2  ;;  %17 = vst [vmem:[%s41_s1 + $0x4] sm:$0xf] %v12_v3 }

// kernel: mano_reprojection_forward.1
= control target key start
LH: loop header
LB: loop body
LE: loop exit
PB: predicated region body
PF: predicated region fallthrough
CT: control target
= control target key end

     0   :  { %v1562_v8 = vmov 0   ;;  %v1563_v39 = vmov 1966171168   ;;  %v171_v41 = vlaneseq  ;;  %vm873_vm0 = vcmask 1041408   ;;  %s1999_s3 = inlined_call_operand.vmem [shape: bf16[512,384], index: 3, kind: input, shape index: {}]   ;;  %s2000_s0 = inlined_call_operand.vmem [shape: bf16[2,512], index: 0, kind: input, shape index: {}]   ;;  %s2001_s7 = inlined_call_operand.vmem [shape: f32[6,1], index: 7, kind: input, shape index: {}]   ;;  %s2002_s4 = inlined_call_operand.vmem [shape: f32[10,384], index: 4, kind: input, shape index: {}]   ;;  %s2003_s6 = inlined_call_operand.vmem [shape: f32[52,128], index: 6, kind: input, shape index: {}]   ;;  %s2004_s1 = inlined_call_operand.vmem [shape: f32[2,10], index: 1, kind: input, shape index: {}]   ;;  %s2005_s2 = inlined_call_operand.vmem [shape: f32[24,52], index: 2, kind: input, shape index: {}]   ;;  %s2006_s5 = inlined_call_operand.vmem [shape: f32[1,384], index: 5, kind: input, shape index: {}]   ;;  %s2007_s8 = inlined_call_operand.vmem [shape: f32[6,128], index: 8, kind: output, shape index: {}]  }
   0x1   :  { %v1434_v0 = vld [vmem:[%s1999_s3 + $0xac] ss:$12 sps:$4 sm:$0xff]   ;;  %v1438_v2 = vld [vmem:[%s1999_s3 + $0xa8] ss:$12 sps:$4 sm:$0xff]   ;;  %v1444_v6 = vld [vmem:[%s1999_s3 + $0x90] ss:$12 sps:$4 sm:$0xff]   ;;  %1432 = vset.pattern.permute.xlu0 %v1562_v8  ;;  %1433 = vset.pattern.permute.xlu1 %v1562_v8  ;;  %v169_v40 = vunpack.c.l.s4 %v1563_v39 }
   0x2   :  { %v1436_v1 = vld [vmem:[%s1999_s3 + $0x22c] ss:$12 sps:$4 sm:$0xff]   ;;  %700 = vmatprep.subr.bf16.mxu0 %v1434_v0  ;;  %v1439_v3 = vld [vmem:[%s1999_s3 + $0x228] ss:$12 sps:$4 sm:$0xff]   ;;  %v1445_v7 = vld [vmem:[%s1999_s3 + $0x210] ss:$12 sps:$4 sm:$0xff]  }
   0x3   :  { %741 = vmatprep.subr.bf16.mxu1 %v1436_v1  ;;  %v1440_v4 = vld [vmem:[%s1999_s3 + $0x94] ss:$12 sps:$4 sm:$0xff]   ;;  %701 = vmatpush1.bf16.msra.mxu0 %v1438_v2  ;;  %v1446_v9 = vld [vmem:[%s1999_s3 + $0x7c] ss:$12 sps:$4 sm:$0xff]   ;;  %v1450_v11 = vld [vmem:[%s1999_s3 + $0x78] ss:$12 sps:$4 sm:$0xff]   ;;  %v170_v46 = vunpack.c.0.s8 %v169_v40 }
   0x4   :  { %742 = vmatpush1.bf16.msra.mxu1 %v1439_v3  ;;  %v1442_v5 = vld [vmem:[%s1999_s3 + $0x214] ss:$12 sps:$4 sm:$0xff]   ;;  %702 = vmatprep.subr.bf16.mxu0 %v1440_v4  ;;  %v1448_v10 = vld [vmem:[%s1999_s3 + $0x1fc] ss:$12 sps:$4 sm:$0xff]   ;;  %v1451_v12 = vld [vmem:[%s1999_s3 + $0x1f8] ss:$12 sps:$4 sm:$0xff]  }
   0x5   :  { %743 = vmatprep.subr.bf16.mxu1 %v1442_v5  ;;  %v1452_v13 = vld [vmem:[%s1999_s3 + $0x64] ss:$12 sps:$4 sm:$0xff]   ;;  %v1456_v15 = vld [vmem:[%s1999_s3 + $0x60] ss:$12 sps:$4 sm:$0xff]   ;;  %v1462_v19 = vld [vmem:[%s1999_s3 + $0x48] ss:$12 sps:$4 sm:$0xff]  }
   0x6   :  { %v1454_v14 = vld [vmem:[%s1999_s3 + $0x1e4] ss:$12 sps:$4 sm:$0xff]   ;;  %v1457_v16 = vld [vmem:[%s1999_s3 + $0x1e0] ss:$12 sps:$4 sm:$0xff]   ;;  %v1463_v20 = vld [vmem:[%s1999_s3 + $0x1c8] ss:$12 sps:$4 sm:$0xff]  }
   0x7   :  { %703 = vmatpush1.bf16.msra.mxu0 %v1444_v6  ;;  %v1458_v17 = vld [vmem:[%s1999_s3 + $0x4c] ss:$12 sps:$4 sm:$0xff]   ;;  %v1464_v21 = vld [vmem:[%s1999_s3 + $0x34] ss:$12 sps:$4 sm:$0xff]   ;;  %v1468_v23 = vld [vmem:[%s1999_s3 + $0x30] ss:$12 sps:$4 sm:$0xff]  }
   0x8   :  { %744 = vmatpush1.bf16.msra.mxu1 %v1445_v7  ;;  %704 = vmatprep.subr.bf16.mxu0 %v1446_v9  ;;  %v1460_v18 = vld [vmem:[%s1999_s3 + $0x1cc] ss:$12 sps:$4 sm:$0xff]   ;;  %v1466_v22 = vld [vmem:[%s1999_s3 + $0x1b4] ss:$12 sps:$4 sm:$0xff]   ;;  %v1469_v24 = vld [vmem:[%s1999_s3 + $0x1b0] ss:$12 sps:$4 sm:$0xff]  }
   0x9   :  { %745 = vmatprep.subr.bf16.mxu1 %v1448_v10  ;;  %v1470_v25 = vld [vmem:[%s1999_s3 + $0x1c] ss:$12 sps:$4 sm:$0xff]   ;;  %v1474_v27 = vld [vmem:[%s1999_s3 + $0x18] ss:$12 sps:$4 sm:$0xff]   ;;  %v1480_v31 = vld [vmem:[%s1999_s3] ss:$12 sps:$4 sm:$0xff]  }
   0xa   :  { %v1472_v26 = vld [vmem:[%s1999_s3 + $0x19c] ss:$12 sps:$4 sm:$0xff]   ;;  %v1475_v28 = vld [vmem:[%s1999_s3 + $0x198] ss:$12 sps:$4 sm:$0xff]   ;;  %v1481_v32 = vld [vmem:[%s1999_s3 + $0x180] ss:$12 sps:$4 sm:$0xff]  }
   0xb   :  { %705 = vmatpush1.bf16.msra.mxu0 %v1450_v11  ;;  %v1476_v29 = vld [vmem:[%s1999_s3 + $0x4] ss:$12 sps:$4 sm:$0xff]   ;;  %v1482_v33 = vld [vmem:[%s1999_s3 + $0x16c] ss:$12 sps:$4 sm:$0xff]   ;;  %v1486_v35 = vld [vmem:[%s1999_s3 + $0x168] ss:$12 sps:$4 sm:$0xff]  }
   0xc   :  { %746 = vmatpush1.bf16.msra.mxu1 %v1451_v12  ;;  %706 = vmatprep.subr.bf16.mxu0 %v1452_v13  ;;  %v1478_v30 = vld [vmem:[%s1999_s3 + $0x184] ss:$12 sps:$4 sm:$0xff]   ;;  %v1484_v34 = vld [vmem:[%s1999_s3 + $0x2ec] ss:$12 sps:$4 sm:$0xff]   ;;  %v1487_v36 = vld [vmem:[%s1999_s3 + $0x2e8] ss:$12 sps:$4 sm:$0xff]  }
   0xd   :  { %747 = vmatprep.subr.bf16.mxu1 %v1454_v14  ;;  %v1488_v37 = vld [vmem:[%s1999_s3 + $0x154] ss:$12 sps:$4 sm:$0xff]   ;;  %v1492_v42 = vld [vmem:[%s1999_s3 + $0x150] ss:$12 sps:$4 sm:$0xff]   ;;  %v1737_v47 = vshrl.u32 %v171_v41, 7  ;;  %vm1067_vm1 = vcmask 1043456  }
   0xe   :  { %v1490_v38 = vld [vmem:[%s1999_s3 + $0x2d4] ss:$12 sps:$4 sm:$0xff]   ;;  %v1493_v43 = vld [vmem:[%s1999_s3 + $0x2d0] ss:$12 sps:$4 sm:$0xff]   ;;  %v1498_v48 = vld [vmem:[%s1999_s3 + $0x138] ss:$12 sps:$4 sm:$0xff]  }
   0xf   :  { %707 = vmatpush1.bf16.msra.mxu0 %v1456_v15  ;;  %v1494_v44 = vld [vmem:[%s1999_s3 + $0x13c] ss:$12 sps:$4 sm:$0xff]   ;;  %v1499_v49 = vld [vmem:[%s1999_s3 + $0x2b8] ss:$12 sps:$4 sm:$0xff]   ;;  %v1504_v52 = vld [vmem:[%s1999_s3 + $0x120] ss:$12 sps:$4 sm:$0xff]   ;;  %v173_v54 = vsub.s32 %v170_v46, %v1737_v47 }
  0x10   :  { %748 = vmatpush1.bf16.msra.mxu1 %v1457_v16  ;;  %708 = vmatprep.subr.bf16.mxu0 %v1458_v17  ;;  %v1496_v45 = vld [vmem:[%s1999_s3 + $0x2bc] ss:$12 sps:$4 sm:$0xff]   ;;  %v1500_v50 = vld [vmem:[%s1999_s3 + $0x124] ss:$12 sps:$4 sm:$0xff]   ;;  %v1505_v53 = vld [vmem:[%s1999_s3 + $0x2a0] ss:$12 sps:$4 sm:$0xff]  }
  0x11   :  { %749 = vmatprep.subr.bf16.mxu1 %v1460_v18  ;;  %v1502_v51 = vld [vmem:[%s1999_s3 + $0x2a4] ss:$12 sps:$4 sm:$0xff]   ;;  %v1235_v55 = vld.sshfl [vmem:[%s2000_s0] sm:$0x33 pattern:$0x75316420] }
  0x12   :  { %v1506_v56 = vld [vmem:[%s1999_s3 + $0x10c] ss:$12 sps:$4 sm:$0xff]   ;;  %v167_v57 = vcombine.high %v1235_v55, %v1235_v55  ;;  %v1510_v59 = vld [vmem:[%s1999_s3 + $0x108] ss:$12 sps:$4 sm:$0xff]   ;;  %v1516_v1 = vld [vmem:[%s1999_s3 + $0xf0] ss:$12 sps:$4 sm:$0xff]   ;;  %v1809_v11 = vrot.slane %v1235_v55, %v173_v54 }
  0x13   :  { %709 = vmatpush1.bf16.msra.mxu0 %v1462_v19  ;;  %v1508_v58 = vld [vmem:[%s1999_s3 + $0x28c] ss:$12 sps:$4 sm:$0xff]   ;;  %v1511_v61 = vld [vmem:[%s1999_s3 + $0x288] ss:$12 sps:$4 sm:$0xff]   ;;  %v1517_v2 = vld [vmem:[%s1999_s3 + $0x270] ss:$12 sps:$4 sm:$0xff]  }
  0x14   :  { %750 = vmatpush1.bf16.msra.mxu1 %v1463_v20  ;;  %710 = vmatprep.subr.bf16.mxu0 %v1464_v21  ;;  %v181_v60 = vrot.slane %v167_v57, %v173_v54  ;;  %v1512_v62 = vld [vmem:[%s1999_s3 + $0xf4] ss:$12 sps:$4 sm:$0xff]   ;;  %v1518_v3 = vld [vmem:[%s1999_s3 + $0xdc] ss:$12 sps:$4 sm:$0xff]   ;;  %v1522_v5 = vld [vmem:[%s1999_s3 + $0xd8] ss:$12 sps:$4 sm:$0xff]   ;;  %v1822_v15 = vcombine.high %v1809_v11, %v1809_v11 }
  0x15   :  { %751 = vmatprep.subr.bf16.mxu1 %v1466_v22  ;;  %v1514_v0 = vld [vmem:[%s1999_s3 + $0x274] ss:$12 sps:$4 sm:$0xff]   ;;  %v1520_v4 = vld [vmem:[%s1999_s3 + $0x25c] ss:$12 sps:$4 sm:$0xff]   ;;  %v1523_v6 = vld [vmem:[%s1999_s3 + $0x258] ss:$12 sps:$4 sm:$0xff]  }
  0x16   :  { %v183_v63 = vcombine.high %v181_v60, %v181_v60  ;;  %732 = vmatprep.mubr.bf16.mxu0 %v181_v60  ;;  %v1524_v7 = vld [vmem:[%s1999_s3 + $0xc4] ss:$12 sps:$4 sm:$0xff]   ;;  %v1528_v9 = vld [vmem:[%s1999_s3 + $0xc0] ss:$12 sps:$4 sm:$0xff]   ;;  %v1560_v46 = vld [vmem:[%s1999_s3 + $0x8] ss:$12 sps:$4 sm:$0xff]  }
  0x17   :  { %711 = vmatpush1.bf16.msra.mxu0 %v1468_v23  ;;  %v1526_v8 = vld [vmem:[%s1999_s3 + $0x244] ss:$12 sps:$4 sm:$0xff]   ;;  %v1529_v10 = vld [vmem:[%s1999_s3 + $0x240] ss:$12 sps:$4 sm:$0xff]   ;;  %v1053_v57 = vld [vmem:[%s2003_s6 + $0x18] sm:$0xff]  ;;  %vm869_vm2 = vcmask 80896  }
  0x18   :  { %752 = vmatpush1.bf16.msra.mxu1 %v1469_v24  ;;  %712 = vmatprep.subr.bf16.mxu0 %v1470_v25  ;;  %v1530_v12 = vld [vmem:[%s1999_s3 + $0x170] ss:$12 sps:$4 sm:$0xff]   ;;  %v1534_v17 = vld [vmem:[%s1999_s3 + $0x158] ss:$12 sps:$4 sm:$0xff]   ;;  %v1538_v21 = vld [vmem:[%s1999_s3 + $0x140] ss:$12 sps:$4 sm:$0xff]  }
  0x19   :  { %753 = vmatprep.subr.bf16.mxu1 %v1472_v26  ;;  %773 = vmatprep.mubr.bf16.mxu1 %v183_v63  ;;  %v1531_v13 = vld [vmem:[%s1999_s3 + $0x2f0] ss:$12 sps:$4 sm:$0xff]   ;;  %v1535_v18 = vld [vmem:[%s1999_s3 + $0x2d8] ss:$12 sps:$4 sm:$0xff]   ;;  %v1539_v22 = vld [vmem:[%s1999_s3 + $0x2c0] ss:$12 sps:$4 sm:$0xff]  }
  0x1a   :  { %v1532_v14 = vld [vmem:[%s1999_s3 + $0xb0] ss:$12 sps:$4 sm:$0xff]   ;;  %v1536_v19 = vld [vmem:[%s1999_s3 + $0x98] ss:$12 sps:$4 sm:$0xff]   ;;  %v1540_v23 = vld [vmem:[%s1999_s3 + $0x80] ss:$12 sps:$4 sm:$0xff]  }
  0x1b   :  { %713 = vmatpush1.bf16.msra.mxu0 %v1474_v27  ;;  %v1533_v16 = vld [vmem:[%s1999_s3 + $0x230] ss:$12 sps:$4 sm:$0xff]   ;;  %v1537_v20 = vld [vmem:[%s1999_s3 + $0x218] ss:$12 sps:$4 sm:$0xff]   ;;  %v1541_v24 = vld [vmem:[%s1999_s3 + $0x200] ss:$12 sps:$4 sm:$0xff]  }
  0x1c   :  { %754 = vmatpush1.bf16.msra.mxu1 %v1475_v28  ;;  %714 = vmatprep.subr.bf16.mxu0 %v1476_v29  ;;  %v1542_v25 = vld [vmem:[%s1999_s3 + $0x128] ss:$12 sps:$4 sm:$0xff]   ;;  %v1546_v29 = vld [vmem:[%s1999_s3 + $0x110] ss:$12 sps:$4 sm:$0xff]   ;;  %v1553_v39 = vld [vmem:[%s1999_s3 + $0x1b8] ss:$12 sps:$4 sm:$0xff]  }
  0x1d   :  { %755 = vmatprep.subr.bf16.mxu1 %v1478_v30  ;;  %v1543_v26 = vld [vmem:[%s1999_s3 + $0x2a8] ss:$12 sps:$4 sm:$0xff]   ;;  %v1547_v30 = vld [vmem:[%s1999_s3 + $0x290] ss:$12 sps:$4 sm:$0xff]   ;;  %v1554_v40 = vld [vmem:[%s1999_s3 + $0xe0] ss:$12 sps:$4 sm:$0xff]  }
  0x1e   :  { %v1544_v27 = vld [vmem:[%s1999_s3 + $0x68] ss:$12 sps:$4 sm:$0xff]   ;;  %v1555_v41 = vld [vmem:[%s1999_s3 + $0x260] ss:$12 sps:$4 sm:$0xff]   ;;  %vm1565_vm3 = vmmov 0   ;;  %vm1057_vm4 = vcmask 424960  }
  0x1f   :  { %715 = vmatpush1.bf16.msra.mxu0 %v1480_v31  ;;  %v1545_v28 = vld [vmem:[%s1999_s3 + $0x1e8] ss:$12 sps:$4 sm:$0xff]   ;;  %v1548_v31 = vld [vmem:[%s1999_s3 + $0x50] ss:$12 sps:$4 sm:$0xff]   ;;  %v863_v55 = vld [vmem:[%s2002_s4] sm:$0xff] }
  0x20   :  { %756 = vmatpush1.bf16.msra.mxu1 %v1481_v32  ;;  %716 = vmatprep.subr.bf16.mxu0 %v1482_v33  ;;  %v1549_v32 = vld [vmem:[%s1999_s3 + $0x1d0] ss:$12 sps:$4 sm:$0xff]   ;;  %v1550_v33 = vld [vmem:[%s1999_s3 + $0xf8] ss:$12 sps:$4 sm:$0xff]   ;;  %v1055_v54 = vld [vmem:[%s2003_s6 + $0x28] sm:$0xff] }
  0x21   :  { %757 = vmatprep.subr.bf16.mxu1 %v1484_v34  ;;  %v1551_v34 = vld [vmem:[%s1999_s3 + $0x278] ss:$12 sps:$4 sm:$0xff]  }
  0x23   :  { %717 = vmatpush2.bf16.msra.mxu0 %v1486_v35  ;;  %v1197_v35 = vld [vmem:[%s2001_s7 + $0x2] sm:$0x3] }
  0x24   :  { %758 = vmatpush2.bf16.msra.mxu1 %v1487_v36  ;;  %718 = vmatprep.subr.bf16.mxu0 %v1488_v37  ;;  %v1172_v36 = vld [vmem:[%s2001_s7] sm:$0x3]  ;;  %v1222_v37 = vld [vmem:[%s2001_s7 + $0x4] sm:$0x3] }
  0x25   :  { %759 = vmatprep.subr.bf16.mxu1 %v1490_v38  ;;  %1200 = vperm.xlu0 %1432, %v1197_v35   ;;  %v1552_v38 = vld [vmem:[%s1999_s3 + $0x38] ss:$12 sps:$4 sm:$0xff]  }
  0x26   :  { %1175 = vperm.xlu1 %1433, %v1172_v36  }
  0x27   :  { %719 = vmatpush2.bf16.msra.mxu0 %v1492_v42  ;;  %v1556_v42 = vld [vmem:[%s1999_s3 + $0x20] ss:$12 sps:$4 sm:$0xff]  }
  0x28   :  { %760 = vmatpush2.bf16.msra.mxu1 %v1493_v43  ;;  %720 = vmatprep.subr.bf16.mxu0 %v1494_v44  ;;  %v1557_v43 = vld [vmem:[%s1999_s3 + $0x1a0] ss:$12 sps:$4 sm:$0xff]   ;;  %v1558_v44 = vld [vmem:[%s1999_s3 + $0xc8] ss:$12 sps:$4 sm:$0xff]  }
  0x29   :  { %761 = vmatprep.subr.bf16.mxu1 %v1496_v45  ;;  %1225 = vperm.xlu0 %1432, %v1222_v37   ;;  %v1559_v45 = vld [vmem:[%s1999_s3 + $0x248] ss:$12 sps:$4 sm:$0xff]  }
  0x2b   :  { %721 = vmatpush2.bf16.msra.mxu0 %v1498_v48  ;;  %v1561_v48 = vld [vmem:[%s1999_s3 + $0x188] ss:$12 sps:$4 sm:$0xff]  }
  0x2c   :  { %762 = vmatpush2.bf16.msra.mxu1 %v1499_v49  ;;  %722 = vmatprep.subr.bf16.mxu0 %v1500_v50  ;;  %v867_v49 = vld [vmem:[%s2002_s4 + $0x20] sm:$0x3]  ;;  %v1564_v50 = vmov 0.0  }
  0x2d   :  { %763 = vmatprep.subr.bf16.mxu1 %v1502_v51  ;;  %v1056_v51 = vld [vmem:[%s2003_s6 + $0x30] sm:$0xf] }
  0x2f   :  { %723 = vmatpush2.bf16.msra.mxu0 %v1504_v52  ;;  %v866_v52 = vld [vmem:[%s2002_s4 + $0x18] sm:$0x3] }
  0x30   :  { %764 = vmatpush2.bf16.msra.mxu1 %v1505_v53  ;;  %724 = vmatprep.subr.bf16.mxu0 %v1506_v56  ;;  %v864_v53 = vld [vmem:[%s2002_s4 + $0x8] sm:$0xff]  ;;  %v1054_v56 = vld [vmem:[%s2003_s6 + $0x20] sm:$0xff] }
  0x31   :  { %765 = vmatprep.subr.bf16.mxu1 %v1508_v58  ;;  %v862_v58 = vld [vmem:[%s2004_s1] sm:$0x3] }
  0x33   :  { %725 = vmatpush2.bf16.msra.mxu0 %v1510_v59  ;;  %v868_v59 = vld [vmem:[%s2002_s4 + $0x28] sm:$0x3] }
  0x34   :  { %766 = vmatpush2.bf16.msra.mxu1 %v1511_v61  ;;  %726 = vmatprep.subr.bf16.mxu0 %v1512_v62  ;;  %v865_v61 = vld [vmem:[%s2002_s4 + $0x10] sm:$0xff]  ;;  %v1051_v62 = vld [vmem:[%s2003_s6 + $0x8] sm:$0xff] }
  0x35   :  { %767 = vmatprep.subr.bf16.mxu1 %v1514_v0  ;;  %v1047_v0 = vld [vmem:[%s2005_s2] sm:$0xff] }
  0x37   :  { %727 = vmatpush2.bf16.msra.mxu0 %v1516_v1  ;;  %v1048_v1 = vld [vmem:[%s2005_s2 + $0x8] sm:$0xff] }
  0x38   :  { %768 = vmatpush2.bf16.msra.mxu1 %v1517_v2  ;;  %728 = vmatprep.subr.bf16.mxu0 %v1518_v3  ;;  %v1049_v2 = vld [vmem:[%s2005_s2 + $0x10] sm:$0xff] }
  0x39   :  { %769 = vmatprep.subr.bf16.mxu1 %v1520_v4 }
  0x3b   :  { %729 = vmatpush2.bf16.msra.mxu0 %v1522_v5 }
  0x3c   :  { %770 = vmatpush2.bf16.msra.mxu1 %v1523_v6  ;;  %730 = vmatprep.subr.bf16.mxu0 %v1524_v7 }
  0x3d   :  { %771 = vmatprep.subr.bf16.mxu1 %v1526_v8 }
  0x3f   :  { %731 = vmatpush2.bf16.msra.mxu0 %v1528_v9 }
  0x40   :  { %772 = vmatpush2.bf16.msra.mxu1 %v1529_v10  ;;  %1341 = vmatprep.subr.bf16.mxu0 %v1530_v12 }
  0x41   :  { %1363 = vmatprep.subr.bf16.mxu1 %v1531_v13 }
  0x42   :  { %733 = vmatmul.mubr.bf16.vlgmr.msra.gmra.mxu0 %v1809_v11 }
  0x43   :  { %774 = vmatmul.mubr.bf16.vlgmr.msra.gmra.mxu1 %v1822_v15  ;;  %1342 = vmatpush3.bf16.msra.mxu0 %v1532_v14 }
  0x44   :  { %1364 = vmatpush3.bf16.msra.mxu1 %v1533_v16  ;;  %1343 = vmatprep.subr.bf16.mxu0 %v1534_v17  ;;  %v1024_v16 = vld [vmem:[%s2006_s5] sm:$0x7]  ;;  %v1032_v17 = vsub.s32 1, %v1737_v47 }
  0x45   :  { %1365 = vmatprep.subr.bf16.mxu1 %v1535_v18  ;;  %814 = vmatprep.mubr.bf16.mxu0 %v181_v60  ;;  %v1052_v60 = vld [vmem:[%s2003_s6 + $0x10] sm:$0xff] }
  0x46   :  { %854 = vmatprep.mubr.bf16.mxu1 %v183_v63  ;;  %v1050_v63 = vld [vmem:[%s2003_s6] sm:$0xff] }
  0x47   :  { %1344 = vmatpush3.bf16.msra.mxu0 %v1536_v19 }
  0x48   :  { %1366 = vmatpush3.bf16.msra.mxu1 %v1537_v20  ;;  %1345 = vmatprep.subr.bf16.mxu0 %v1538_v21  ;;  %v1036_v20 = vsub.s32 2, %v1737_v47 }
  0x49   :  { %1367 = vmatprep.subr.bf16.mxu1 %v1539_v22 }
  0x4b   :  { %1346 = vmatpush3.bf16.msra.mxu0 %v1540_v23 }
  0x4c   :  { %1368 = vmatpush3.bf16.msra.mxu1 %v1541_v24  ;;  %1347 = vmatprep.subr.bf16.mxu0 %v1542_v25  ;;  %v1033_v24 = vrot.slane %v1024_v16, %v1032_v17 }
  0x4d   :  { %1369 = vmatprep.subr.bf16.mxu1 %v1543_v26 }
  0x4f   :  { %1348 = vmatpush3.bf16.msra.mxu0 %v1544_v27 }
  0x50   :  { %1370 = vmatpush3.bf16.msra.mxu1 %v1545_v28  ;;  %1349 = vmatprep.subr.bf16.mxu0 %v1546_v29  ;;  %v1037_v28 = vrot.slane %v1024_v16, %v1036_v20 }
  0x51   :  { %1371 = vmatprep.subr.bf16.mxu1 %v1547_v30 }
  0x53   :  { %1350 = vmatpush3.bf16.msra.mxu0 %v1548_v31 }
  0x54   :  { %1372 = vmatpush3.bf16.msra.mxu1 %v1549_v32  ;;  %1351 = vmatprep.subr.bf16.mxu0 %v1550_v33 }
  0x55   :  { %1373 = vmatprep.subr.bf16.mxu1 %v1551_v34 }
  0x57   :  { %1352 = vmatpush3.bf16.msra.mxu0 %v1552_v38 }
  0x58   :  { %1374 = vmatpush3.bf16.msra.mxu1 %v1553_v39  ;;  %1353 = vmatprep.subr.bf16.mxu0 %v1554_v40 }
  0x59   :  { %1375 = vmatprep.subr.bf16.mxu1 %v1555_v41 }
  0x5b   :  { %1354 = vmatpush3.bf16.msra.mxu0 %v1556_v42 }
  0x5c   :  { %1376 = vmatpush3.bf16.msra.mxu1 %v1557_v43  ;;  %1355 = vmatprep.subr.bf16.mxu0 %v1558_v44 }
  0x5d   :  { %1377 = vmatprep.subr.bf16.mxu1 %v1559_v45 }
  0x5f   :  { %1356 = vmatpush3.bf16.msra.mxu0 %v1560_v46 }
  0x60   :  { %1378 = vmatpush3.bf16.msra.mxu1 %v1561_v48  ;;  %1405 = vmatprep.subr.mxu0 %v1564_v50 }
  0x61   :  { %1332 = vmatprep.subr.msk.mxu1 %vm873_vm0, %v867_v49 }
  0x62   :  { %815 = vmatmul.mubr.bf16.vlgmr.msra.gmra.mxu0 %v1809_v11 }
  0x63   :  { %855 = vmatmul.mubr.bf16.vlgmr.msra.gmra.mxu1 %v1822_v15  ;;  %1406 = vmatpush3.msk.msra.mxu0 %vm1067_vm1, %v1056_v51  ;;  %v1028_v15 = vsub.s32 0, %v1737_v47 }
  0x64   :  { %1333 = vmatpush1.msk.msra.mxu1 %vm873_vm0, %v866_v52  ;;  %1407 = vmatprep.subr.mxu0 %v1564_v50 }
  0x65   :  { %913 = vmatprep.subr.mxu1 %v864_v53  ;;  %1408 = vmatpush3.msra.mxu0 %v1055_v54  ;;  %v1029_v23 = vrot.slane %v1024_v16, %v1028_v15 }
  0x66   :  { %914 = vmatpush1.msra.mxu1 %v863_v55  ;;  %1409 = vmatprep.subr.mxu0 %v1564_v50 }
  0x67   :  { %947 = vmatprep.mubr.f32.mxu1 %v1564_v50  ;;  %1410 = vmatpush3.msra.mxu0 %v1054_v56 }
  0x68   :  { %1398 = vmatprep.subr.mxu1 %v1564_v50  ;;  %1411 = vmatprep.subr.mxu0 %v1564_v50 }
  0x69   :  { %1419 = vmatprep.mubr.msk.f32.mxu0 %vm1565_vm3, %v1564_v50  ;;  %1412 = vmatpush3.msra.mxu0 %v1053_v57 }
  0x6a   :  { %1413 = vmatprep.subr.mxu0 %v1564_v50 }
  0x6b   :  { %1334 = vmatmul.mubr.msk.f32.vlgmr.msra.gmra.mxu1 %vm869_vm2, %v862_v58  ;;  %1414 = vmatpush3.msra.mxu0 %v1052_v60 }
  0x6c   :  { %1399 = vmatpush3.msk.msra.mxu1 %vm873_vm0, %v868_v59  ;;  %1415 = vmatprep.subr.mxu0 %v1564_v50 }
  0x6d   :  { %1400 = vmatprep.subr.mxu1 %v1564_v50  ;;  %1402 = vmatprep.mubr.msk.f32.mxu1 %vm1565_vm3, %v1564_v50 }
  0x6e   :  { %1401 = vmatpush3.msra.mxu1 %v865_v61  ;;  %1416 = vmatpush3.msra.mxu0 %v1051_v62 }
  0x6f   :  { %1403 = vmatmul.mubr.msk.f32.vlgmr.msra.gmra.mxu1 %vm869_vm2, %v862_v58  ;;  %1417 = vmatprep.subr.mxu0 %v1564_v50 }
  0x70   :  { %1418 = vmatpush3.msra.mxu0 %v1050_v63 }
  0x71   :  { %1420 = vmatmul.mubr.msk.f32.vlgmr.msra.gmra.mxu0 %vm1057_vm4, %v1047_v0 }
  0x72   :  { %1422 = vmatprep.mubr.msk.f32.mxu0 %vm1565_vm3, %v1564_v50 }
  0x75   :  { %1423 = vmatmul.mubr.msk.f32.gmra.mxu0 %vm1057_vm4, %v1048_v1 }
  0x76   :  { %1425 = vmatprep.mubr.msk.f32.mxu0 %vm1565_vm3, %v1564_v50 }
  0x79   :  { %1426 = vmatmul.mubr.msk.f32.gmra.mxu0 %vm1057_vm4, %v1049_v2 }
  0xa0   :  { %v1201_v57 = vpop.permute.xlu0 %1200 }
 0x102   :  { %v734_v3 = vpop.f32.mrf.mxu0 }
 0x103   :  { %v775_v4 = vpop.f32.mrf.mxu1 }
 0x104   :  { %v736_v5 = vpop.f32.mrf.mxu0  ;;  %v776_v33 = vadd.f32 %v775_v4, %v734_v3 }
 0x105   :  { %v777_v6 = vpop.f32.mrf.mxu1 }
 0x106   :  { %v738_v7 = vpop.f32.mrf.mxu0  ;;  %v778_v31 = vadd.f32 %v777_v6, %v736_v5 }
 0x107   :  { %v779_v8 = vpop.f32.mrf.mxu1 }
 0x108   :  { %v739_v9 = vpop.f32.mrf.mxu0 }
 0x109   :  { %v780_v10 = vpop.f32.mrf.mxu1 }
 0x122   :  { %v1357_v11 = vpop.f32.mrf.mxu0 }
 0x123   :  { %v1379_v12 = vpop.f32.mrf.mxu1 }
 0x124   :  { %v1358_v13 = vpop.f32.mrf.mxu0 }
 0x125   :  { %v1380_v14 = vpop.f32.mrf.mxu1  ;;  %v1359_v26 = vadd.f32 %v1358_v13, %v1357_v11  ;;  %v1176_v11 = vpop.permute.xlu1 %1175 }
 0x126   :  { %v1360_v18 = vpop.f32.mrf.mxu0  ;;  %v1381_v27 = vadd.f32 %v1380_v14, %v1379_v12  ;;  %v1226_v12 = vpop.permute.xlu0 %1225  ;;  %v1202_v14 = vrot.slane %v1201_v57, 6 }
 0x127   :  { %v1382_v19 = vpop.f32.mrf.mxu1  ;;  %v1227_v20 = vrot.slane %v1226_v12, 4 }
 0x128   :  { %v1361_v21 = vpop.f32.mrf.mxu0  ;;  %v857_v35 = vadd.f32 %v1381_v27, %v1359_v26 }
 0x129   :  { %v1383_v22 = vpop.f32.mrf.mxu1 }
 0x12b   :  { %v949_v25 = vpop.f32.mrf.mxu1 }
 0x12c   :  { %v1041_v29 = vadd.f32 %v1029_v23, %v949_v25 }
 0x12d   :  { %v951_v30 = vpop.f32.mrf.mxu1 }
 0x12e   :  { %v1042_v32 = vadd.f32 %v1033_v24, %v951_v30  ;;  %v1044_v38 = vadd.f32 %v1041_v29, %v776_v33 }
 0x12f   :  { %v1020_v34 = vpop.f32.mrf.mxu1 }
 0x130   :  { %v1045_v36 = vadd.f32 %v1042_v32, %v778_v31  ;;  %v1043_v37 = vadd.f32 %v1037_v28, %v1020_v34  ;;  %v1181_v46 = vrot.slane %v1044_v38, 6  ;;  %v1206_v49 = vrot.slane %v1044_v38, 4 }
 0x131   :  { %v1404_v39 = vpop.f32.mrf.mxu1  ;;  %v1137_v41 = vpop.f32.mrf.mxu0 }
 0x132   :  { %v1153_v47 = vrot.slane %v1045_v36, 2  ;;  %v1046_v40 = vadd.f32 %v1043_v37, %v857_v35  ;;  %v1209_v48 = vrot.slane %v1045_v36, 6  ;;  %v1151_v50 = vmul.f32 %v1137_v41, %v1044_v38 }
 0x133   :  { %v1421_v45 = vpop.f32.mrf.mxu0  ;;  %v1183_v60 = vmul.f32 %v1181_v46, %v1137_v41  ;;  %v1208_v0 = vmul.f32 %v1206_v49, %v1137_v41 }
 0x134   :  { %v1161_v42 = vrot.slane %v1046_v40, 4  ;;  %v1189_v43 = vrot.slane %v1046_v40, 2  ;;  %v1155_v44 = vmul.f32 %v1153_v47, %v1137_v41 }
 0x135   :  { %v1142_v52 = vpop.f32.mrf.mxu0 }
 0x136   :  { %v1157_v51 = vrot.slane %v1155_v44, 6  ;;  %v1163_v53 = vmul.f32 %v1161_v42, %v1142_v52  ;;  %v1184_v54 = vmul.f32 %v1142_v52, %v1045_v36  ;;  %v1191_v55 = vmul.f32 %v1189_v43, %v1142_v52 }
 0x137   :  { %v1211_v56 = vmul.f32 %v1209_v48, %v1142_v52  ;;  %v1424_v58 = vpop.f32.mrf.mxu0 }
 0x138   :  { %v1159_v59 = vadd.f32 %v1157_v51, %v1151_v50  ;;  %v1165_v61 = vrot.slane %v1163_v53, 4  ;;  %v1186_v62 = vrot.slane %v1184_v54, 6  ;;  %v1193_v3 = vrot.slane %v1191_v55, 4 }
 0x139   :  { %v1213_v63 = vrot.slane %v1211_v56, 6  ;;  %v1147_v1 = vpop.f32.mrf.mxu0 }
 0x13a   :  { %v1188_v2 = vadd.f32 %v1186_v62, %v1183_v60  ;;  %v1169_v4 = vrot.slane %v1147_v1, 2  ;;  %v1216_v5 = vmul.f32 %v1147_v1, %v1046_v40  ;;  %v1167_v7 = vadd.f32 %v1165_v61, %v1159_v59 }
 0x13b   :  { %v1427_v6 = vpop.f32.mrf.mxu0  ;;  %v1215_v9 = vadd.f32 %v1213_v63, %v1208_v0 }
 0x13c   :  { %v1195_v8 = vadd.f32 %v1193_v3, %v1188_v2  ;;  %v1218_v10 = vrot.slane %v1216_v5, 4  ;;  %v1171_v13 = vadd.f32 %v1169_v4, %v1167_v7 }
 0x13e   :  { %v1196_v15 = vadd.f32 %v1195_v8, %v1169_v4  ;;  %v1220_v16 = vadd.f32 %v1218_v10, %v1215_v9  ;;  %v1178_v17 = vadd.f32 %v1176_v11, %v1171_v13 }
 0x140   :  { %v1204_v18 = vadd.f32 %v1202_v14, %v1196_v15  ;;  %v1221_v19 = vadd.f32 %v1220_v16, %v1169_v4  ;;  %1179 = vst [vmem:[%s2007_s8] sm:$0x3] %v1178_v17 }
 0x142   :  { %1205 = vst [vmem:[%s2007_s8] sm:$0xc] %v1204_v18  ;;  %v1229_v21 = vadd.f32 %v1227_v20, %v1221_v19 }
 0x144   :  { %1230 = vst [vmem:[%s2007_s8] sm:$0x30] %v1229_v21 }

</bundles_post_ra>
